<compile_context>
chip_gen: v6e
topology: v6e:2x2x1
jax: 0.10.0
libtpu: 0.0.40
codegen_flags: <defaults>
</compile_context>

<pallas_src>
import typing as tp
import functools
from functools import partial

import jax
import jax.numpy as jnp
from jax.experimental import pallas as pl
from jax.experimental.pallas import tpu as pltpu


class LayerDef(tp.NamedTuple):
    layer_type: str                      # only 'Linear' used here
    hidden_dim: tp.Optional[int]
    batch_norm: bool = False
    activation: tp.Optional[str] = None  # 'ReLU', 'Tanh', 'Sigmoid', or None
    params: dict = {}


# ---------------------------------------------------------------------------
# helpers
# ---------------------------------------------------------------------------
def _round_up(n: int, m: int) -> int:
    return ((n + m - 1) // m) * m


def _pad2d(a, row_mult: int, col_mult: int):
    r, c = a.shape
    rp, cp = _round_up(r, row_mult), _round_up(c, col_mult)
    if (rp, cp) == (r, c):
        return a
    return jnp.pad(a, ((0, rp - r), (0, cp - c)))


def _divisor_tile(dim: int, desired: int, quantum: int) -> int:
    """Largest multiple of `quantum` <= desired that evenly divides `dim`."""
    t = max(quantum, min(desired, dim))
    t = (t // quantum) * quantum
    while t > quantum and dim % t:
        t -= quantum
    if t <= 0 or dim % t:
        return dim
    return t


def _apply_activation(y, activation: tp.Optional[str]):
    if activation is None:
        return y
    if activation == 'ReLU':
        return jnp.maximum(y, 0.0)
    if activation == 'Tanh':
        return jnp.tanh(y)
    if activation == 'Sigmoid':
        return jax.nn.sigmoid(y)
    raise NotImplementedError(activation)


def _itemsize(dtype) -> int:
    return 2 if dtype in (jnp.bfloat16, jnp.float16) else 4


# ---------------------------------------------------------------------------
# chip detection: tile sizes / VMEM budgets per generation
# ---------------------------------------------------------------------------
@functools.lru_cache(maxsize=None)
def _chip_kind() -> str:
    try:
        return jax.devices()[0].device_kind.lower()
    except Exception:
        return ""


@functools.lru_cache(maxsize=None)
def _vmem_capacity_bytes() -> int:
    try:
        cap = int(getattr(pltpu.get_tpu_info(), "vmem_capacity_bytes", 0) or 0)
        if cap > 0:
            return cap
    except Exception:
        pass
    return (64 << 20) if "v7" in _chip_kind() else (128 << 20)


@functools.lru_cache(maxsize=None)
def _tiled_config() -> dict:
    kind = _chip_kind()
    if "v7" in kind:
        # 64 MiB VMEM per TC: keep double-buffered working set small; 3.2 TB/s HBM
        # means ~310 flop/byte already reaches the compute roofline.
        return {"tm": 512, "tn": 768, "tk": 1024, "vmem_limit": 48 << 20}
    if "v6" in kind:
        # 128 MiB VMEM and ~650 flop/byte roofline: use the biggest tiles.
        return {"tm": 1024, "tn": 1024, "tk": 1024, "vmem_limit": 100 << 20}
    if "v5" in kind:
        # ~240 flop/byte roofline; 512 = 4x128 keeps all four MXUs fed.
        return {"tm": 512, "tn": 512, "tk": 1024, "vmem_limit": 64 << 20}
    # Unknown chip: conservative.
    return {"tm": 512, "tn": 512, "tk": 1024, "vmem_limit": 48 << 20}


def _fused_vmem_limit() -> int:
    cap = _vmem_capacity_bytes()
    return min(int(cap * 0.8), cap - (16 << 20))


def _fused_vmem_budget() -> int:
    # Headroom for compiler-managed live values / double buffering.
    return _vmem_capacity_bytes() // 2


def _fused_vmem_estimate(rows: int, in_dim_pad: int, params) -> int:
    total = 2 * rows * in_dim_pad * 2                # bf16 x tile, double-buffered
    for p in params:
        kp, np_ = p['w'].shape
        total += 2 * kp * np_ + 4 * 3 * np_          # weights + packed affine
        total += rows * np_ * (4 + 2)                # live f32 y + bf16 h per layer
    total += 2 * 4 * rows * params[-1]['w'].shape[1]  # f32 out, double-buffered
    return total


# ---------------------------------------------------------------------------
# Fused whole-MLP kernel: every layer's weights are inputs; intermediate
# activations never touch HBM.  refs = (x, w_0, aff_0, w_1, aff_1, ..., out)
#   w_i   : bf16 [Din_pad, Dout_pad]   (128-padded, zero-padded)
#   aff_i : f32  [3, Dout_pad]         rows = (bias, gamma, beta)
# BatchNorm uses per-batch (training-mode) statistics with biased variance,
# matching PyTorch's BatchNorm1d forward in train().
# ---------------------------------------------------------------------------
def _fused_mlp_kernel(*refs, layer_cfgs, n_rows: int, eps: float):
    x_ref, o_ref = refs[0], refs[-1]
    param_refs = refs[1:-1]

    h = x_ref[...]                      # bf16; activations stay bf16 between layers
    b_rows = h.shape[0]
    need_mask = any(bn for bn, _ in layer_cfgs) and (b_rows != n_rows)
    if need_mask:
        row_ids = jax.lax.broadcasted_iota(jnp.int32, (b_rows, 1), 0)
        row_mask = (row_ids < n_rows).astype(jnp.float32)
    inv_n = 1.0 / float(n_rows)
    n_layers = len(layer_cfgs)

    for li, (use_bn, act) in enumerate(layer_cfgs):
        w = param_refs[2 * li][...]             # bf16
        aff = param_refs[2 * li + 1][...]       # f32 [3, Dout_pad]
        # bf16 x bf16 -> f32 accumulation on the MXU
        y = jnp.dot(h, w, preferred_element_type=jnp.float32)
        if use_bn:
            # bias is skipped: it cancels exactly against the mean subtraction.
            if need_mask:
                mean = jnp.sum(y * row_mask, axis=0, keepdims=True) * inv_n
                var = jnp.sum(jnp.square((y - mean) * row_mask),
                              axis=0, keepdims=True) * inv_n
            else:
                mean = jnp.mean(y, axis=0, keepdims=True)
                var = jnp.mean(jnp.square(y - mean), axis=0, keepdims=True)
            y = (y - mean) * jax.lax.rsqrt(var + eps)
            y = y * aff[1:2, :] + aff[2:3, :]
        else:
            y = y + aff[0:1, :]                 # bias
        h = _apply_activation(y, act)
        if li + 1 < n_layers:
            h = h.astype(jnp.bfloat16)          # keep inter-layer activations bf16

    o_ref[...] = h.astype(o_ref.dtype)


def fused_mlp_forward(x, params, layer_defs, eps: float = 1e-5, m_tile=None):
    """Fused MLP. If m_tile is given and there is no BatchNorm, the batch is split
    into M tiles on a 'parallel' grid axis (uses both TCs on v7x, pipelines x/out)."""
    B = x.shape[0]
    has_bn = any(ld.batch_norm for ld in layer_defs)
    x_p = _pad2d(x, 16, 128).astype(jnp.bfloat16)     # 16-row pad: bf16 sublane packing
    dout_last_pad = params[-1]['w'].shape[1]
    layer_cfgs = tuple((ld.batch_norm, ld.activation) for ld in layer_defs)

    use_m_grid = (m_tile is not None) and (not has_bn) and (x_p.shape[0] > m_tile)
    if use_m_grid:
        b_pad = _round_up(x_p.shape[0], m_tile)
        if b_pad != x_p.shape[0]:
            x_p = jnp.pad(x_p, ((0, b_pad - x_p.shape[0]), (0, 0)))
        grid = (b_pad // m_tile,)
        dims = ("parallel",)

        def data_spec(ncols):
            return pl.BlockSpec((m_tile, ncols), lambda i: (i, 0))

        def param_spec(shape):
            return pl.BlockSpec(shape, lambda i: (0,) * len(shape))
    else:
        b_pad = x_p.shape[0]
        grid = ()
        dims = None

        def data_spec(ncols):
            return pl.BlockSpec((b_pad, ncols), lambda: (0, 0))

        def param_spec(shape):
            return pl.BlockSpec(shape, lambda: (0,) * len(shape))

    kernel = partial(_fused_mlp_kernel, layer_cfgs=layer_cfgs, n_rows=B, eps=eps)

    in_specs = [data_spec(x_p.shape[1])]
    operands = [x_p]
    flops = 0
    transc = 0
    bytes_acc = x_p.size * 2
    for p, (use_bn, act) in zip(params, layer_cfgs):
        in_specs += [param_spec(p['w'].shape), param_spec(p['aff'].shape)]
        operands += [p['w'], p['aff']]
        kp, np_ = p['w'].shape
        flops += 2 * b_pad * kp * np_
        if act in ('Tanh', 'Sigmoid'):
            transc += b_pad * np_
        bytes_acc += p['w'].size * 2 + p['aff'].size * 4
    bytes_acc += b_pad * dout_last_pad * 4

    out = pl.pallas_call(
        kernel,
        out_shape=jax.ShapeDtypeStruct((b_pad, dout_last_pad), jnp.float32),
        grid=grid,
        in_specs=in_specs,
        out_specs=data_spec(dout_last_pad),
        compiler_params=pltpu.CompilerParams(
            dimension_semantics=dims,
            vmem_limit_bytes=_fused_vmem_limit()),
        cost_estimate=pl.CostEstimate(flops=flops, transcendentals=transc,
                                      bytes_accessed=bytes_acc),
    )(*operands)
    return out[:B, :layer_defs[-1].hidden_dim]


# ---------------------------------------------------------------------------
# Tiled / pipelined single-layer matmul for layers too large for one VMEM block.
# K-last grid: f32 accumulator scratch, pl.when(k==0) init,
# pl.when(k==last) optional-bias + activation epilogue; M/N 'parallel', K 'arbitrary'.
# Weights must be pre-padded to multiples of 128 (done once at init) — no per-call
# weight re-padding copies.
# ---------------------------------------------------------------------------
def _tiled_linear_kernel(x_ref, w_ref, aff_ref, o_ref, acc_ref, *, activation, add_bias):
    @pl.when(pl.program_id(2) == 0)
    def _():
        acc_ref[...] = jnp.zeros_like(acc_ref)

    acc_ref[...] += jnp.dot(x_ref[...], w_ref[...],
                            preferred_element_type=jnp.float32)

    @pl.when(pl.program_id(2) == pl.num_programs(2) - 1)
    def _():
        y = acc_ref[...]
        if add_bias:
            y = y + aff_ref[0:1, :]
        o_ref[...] = _apply_activation(y, activation).astype(o_ref.dtype)


def tiled_linear(x, w, aff, *, activation=None, add_bias=True,
                 out_dtype=jnp.float32, tm=None, tn=None, tk=None):
    """x: [B, K] f32/bf16, w: [Kp, Np] bf16 (128-padded), aff: [3, Np] f32
    -> [Mp, Np] out_dtype (rows padded to the M tile)."""
    cfg = _tiled_config()
    tm = cfg["tm"] if tm is None else tm
    tn = cfg["tn"] if tn is None else tn
    tk = cfg["tk"] if tk is None else tk

    B, K = x.shape
    Kp, Np = w.shape
    assert Kp % 128 == 0 and Np % 128 == 0 and K <= Kp, "weights must be pre-padded"

    tm = min(tm, _round_up(B, 16))
    tn = _divisor_tile(Np, tn, 128)
    tk = _divisor_tile(Kp, tk, 128)
    Mp = _round_up(B, tm)

    if (B, K) != (Mp, Kp):
        x = jnp.pad(x, ((0, Mp - B), (0, Kp - K)))
    xb = x.astype(jnp.bfloat16)

    grid = (Mp // tm, Np // tn, Kp // tk)
    flops = 2 * Mp * Kp * Np
    transc = Mp * Np if activation in ('Tanh', 'Sigmoid') else 0
    bytes_acc = xb.size * 2 + w.size * 2 + aff.size * 4 + Mp * Np * _itemsize(out_dtype)

    out = pl.pallas_call(
        partial(_tiled_linear_kernel, activation=activation, add_bias=add_bias),
        out_shape=jax.ShapeDtypeStruct((Mp, Np), out_dtype),
        grid_spec=pltpu.PrefetchScalarGridSpec(
            num_scalar_prefetch=0,
            grid=grid,
            in_specs=[pl.BlockSpec((tm, tk), lambda i, j, k: (i, k)),
                      pl.BlockSpec((tk, tn), lambda i, j, k: (k, j)),
                      pl.BlockSpec((3, tn), lambda i, j, k: (0, j))],
            out_specs=pl.BlockSpec((tm, tn), lambda i, j, k: (i, j)),
            scratch_shapes=[pltpu.VMEM((tm, tn), jnp.float32)]),
        compiler_params=pltpu.CompilerParams(
            dimension_semantics=("parallel", "parallel", "arbitrary"),
            vmem_limit_bytes=cfg["vmem_limit"]),
        cost_estimate=pl.CostEstimate(flops=flops, transcendentals=transc,
                                      bytes_accessed=bytes_acc),
    )(xb, w, aff)
    return out


# ---------------------------------------------------------------------------
# Fused BatchNorm epilogue for the tiled fallback:
#  1) per-column (sum, sumsq) reduction kernel (output-resident accumulator over M)
#  2) one normalize + scale/shift + activation kernel
# -> 2 HBM passes over the activations instead of ~6 separate XLA ops.
# ---------------------------------------------------------------------------
def _colstats_kernel(y_ref, stats_ref, *, n_rows, tm):
    im = pl.program_id(1)

    @pl.when(im == 0)
    def _():
        stats_ref[...] = jnp.zeros_like(stats_ref)

    y = y_ref[...].astype(jnp.float32)
    row = jax.lax.broadcasted_iota(jnp.int32, y.shape, 0) + im * tm
    y = jnp.where(row < n_rows, y, 0.0)          # padded rows excluded from stats
    s = jnp.concatenate([jnp.sum(y, axis=0, keepdims=True),
                         jnp.sum(y * y, axis=0, keepdims=True)], axis=0)
    stats_ref[...] += s


def _column_stats(y, *, n_rows):
    Mp, Np = y.shape
    tm = _divisor_tile(Mp, 512, 16)
    tn = _divisor_tile(Np, 1024, 128)
    grid = (Np // tn, Mp // tm)                   # reduction (M) axis last
    return pl.pallas_call(
        partial(_colstats_kernel, n_rows=n_rows, tm=tm),
        out_shape=jax.ShapeDtypeStruct((2, Np), jnp.float32),
        grid_spec=pltpu.PrefetchScalarGridSpec(
            num_scalar_prefetch=0,
            grid=grid,
            in_specs=[pl.BlockSpec((tm, tn), lambda jn, im: (im, jn))],
            out_specs=pl.BlockSpec((2, tn), lambda jn, im: (0, jn))),
        compiler_params=pltpu.CompilerParams(
            dimension_semantics=("parallel", "arbitrary")),
    )(y)


def _bn_act_kernel(y_ref, stats_ref, aff_ref, o_ref, *, n_rows, eps, activation):
    y = y_ref[...].astype(jnp.float32)
    inv_n = 1.0 / float(n_rows)
    mean = stats_ref[0:1, :] * inv_n
    var = stats_ref[1:2, :] * inv_n - mean * mean       # biased variance (BN train)
    yn = (y - mean) * jax.lax.rsqrt(var + eps)
    yn = yn * aff_ref[1:2, :] + aff_ref[2:3, :]
    o_ref[...] = _apply_activation(yn, activation).astype(o_ref.dtype)


def _bn_activation(y, stats, aff, *, n_rows, eps, activation, out_dtype):
    Mp, Np = y.shape
    tm = _divisor_tile(Mp, 512, 16)
    tn = _divisor_tile(Np, 1024, 128)
    grid = (Mp // tm, Np // tn)
    return pl.pallas_call(
        partial(_bn_act_kernel, n_rows=n_rows, eps=eps, activation=activation),
        out_shape=jax.ShapeDtypeStruct((Mp, Np), out_dtype),
        grid_spec=pltpu.PrefetchScalarGridSpec(
            num_scalar_prefetch=0,
            grid=grid,
            in_specs=[pl.BlockSpec((tm, tn), lambda i, j: (i, j)),
                      pl.BlockSpec((2, tn), lambda i, j: (0, j)),
                      pl.BlockSpec((3, tn), lambda i, j: (0, j))],
            out_specs=pl.BlockSpec((tm, tn), lambda i, j: (i, j))),
        compiler_params=pltpu.CompilerParams(
            dimension_semantics=("parallel", "parallel")),
    )(y, stats, aff)


# ---------------------------------------------------------------------------
# Large-model fallback: per-layer K-tiled matmul + fused BN epilogue kernels.
# Activations are threaded between layers already padded (no re-padding copies)
# and kept bf16 between layers (f32 only for the final output / pre-BN values).
# ---------------------------------------------------------------------------
def _mlp_forward_tiled(x, params, layer_defs, eps: float = 1e-5):
    B = x.shape[0]
    n = len(layer_defs)
    h = x
    for li, (p, ld) in enumerate(zip(params, layer_defs)):
        last = (li + 1 == n)
        inter_dtype = jnp.float32 if last else jnp.bfloat16
        if ld.batch_norm:
            # bias add cancels against the BN mean subtraction -> skip in the matmul
            y = tiled_linear(h, p['w'], p['aff'], activation=None,
                             add_bias=False, out_dtype=jnp.float32)
            stats = _column_stats(y, n_rows=B)
            h = _bn_activation(y, stats, p['aff'], n_rows=B, eps=eps,
                               activation=ld.activation, out_dtype=inter_dtype)
        else:
            h = tiled_linear(h, p['w'], p['aff'], activation=ld.activation,
                             add_bias=True, out_dtype=inter_dtype)
    return h[:B, :layer_defs[-1].hidden_dim]


# ---------------------------------------------------------------------------
# MLP wrapper: deterministic parameter construction + dispatch
# ---------------------------------------------------------------------------
def init_mlp_params(key, input_features: int, layer_defs: tp.List[LayerDef]):
    """Weights are zero-padded to multiples of 128 ONCE here (no per-call padding)."""
    params = []
    last = input_features
    for i, ld in enumerate(layer_defs):
        assert ld.layer_type == 'Linear', "only Linear layers supported here"
        kw, kb = jax.random.split(jax.random.fold_in(key, i))
        bound = 1.0 / (last ** 0.5)  # nn.Linear's uniform bound
        w = jax.random.uniform(kw, (last, ld.hidden_dim), jnp.float32, -bound, bound)
        b = jax.random.uniform(kb, (ld.hidden_dim,), jnp.float32, -bound, bound)
        gamma = jnp.ones((ld.hidden_dim,), jnp.float32)   # BN weight init
        beta = jnp.zeros((ld.hidden_dim,), jnp.float32)   # BN bias init

        din_p = _round_up(last, 128)
        dout_p = _round_up(ld.hidden_dim, 128)
        w_p = (jnp.zeros((din_p, dout_p), jnp.float32)
               .at[:last, :ld.hidden_dim].set(w)
               .astype(jnp.bfloat16))
        aff = (jnp.zeros((3, dout_p), jnp.float32)
               .at[0, :ld.hidden_dim].set(b)
               .at[1, :ld.hidden_dim].set(gamma)
               .at[2, :ld.hidden_dim].set(beta))
        params.append(dict(w=w_p, aff=aff))
        last = ld.hidden_dim
    return params


def mlp_forward(x, params, layer_defs, eps: float = 1e-5):
    b_pad = _round_up(x.shape[0], 16)
    in_dim_pad = _round_up(x.shape[1], 128)
    has_bn = any(ld.batch_norm for ld in layer_defs)
    budget = _fused_vmem_budget()
    m_tile = 256
    # BN-free + large batch: fused path with an M-parallel grid (both TCs on v7x).
    if (not has_bn) and b_pad >= 2 * m_tile and \
            _fused_vmem_estimate(m_tile, in_dim_pad, params) <= budget:
        return fused_mlp_forward(x, params, layer_defs, eps=eps, m_tile=m_tile)
    # Whole-batch fused path (required for BatchNorm layers).
    if _fused_vmem_estimate(b_pad, in_dim_pad, params) <= budget:
        return fused_mlp_forward(x, params, layer_defs, eps=eps)
    # Large-model fallback: per-layer K-tiled matmul + fused BN epilogue kernels.
    return _mlp_forward_tiled(x, params, layer_defs, eps=eps)


def mlp_reference(x, params, layer_defs, eps: float = 1e-5):
    """Pure-JAX reference with the same numerics (bf16 matmuls + inter-layer acts,
    f32 epilogue)."""
    B = x.shape[0]
    h = _pad2d(x, 16, 128).astype(jnp.bfloat16)
    n = len(layer_defs)
    for li, (p, ld) in enumerate(zip(params, layer_defs)):
        y = jnp.dot(h, p['w'], preferred_element_type=jnp.float32)
        if ld.batch_norm:
            yv = y[:B]
            m = jnp.mean(yv, axis=0, keepdims=True)
            v = jnp.mean(jnp.square(yv - m), axis=0, keepdims=True)
            y = (y - m) * jax.lax.rsqrt(v + eps) * p['aff'][1:2] + p['aff'][2:3]
        else:
            y = y + p['aff'][0:1]
        h = _apply_activation(y, ld.activation)
        if li + 1 < n:
            h = h.astype(jnp.bfloat16)
    return h[:B, :layer_defs[-1].hidden_dim]


if __name__ == "__main__":
    key = jax.random.PRNGKey(0)
    k = jax.random.split(key, 8)

    # ---- 1) small MLP with BatchNorm: fully fused single-kernel path (grid=()) ----
    in_feat = 32
    defs1 = [LayerDef('Linear', 64, True, 'ReLU'),
             LayerDef('Linear', 32, False, 'Tanh'),
             LayerDef('Linear', 16, False, None)]
    x1 = jax.random.normal(k[0], (8, in_feat), jnp.float32)
    p1 = init_mlp_params(k[1], in_feat, defs1)
    out1 = jax.block_until_ready(mlp_forward(x1, p1, defs1))
    ref1 = mlp_reference(x1, p1, defs1)
    assert out1.shape == (8, 16), out1.shape
    assert jnp.allclose(out1, ref1, atol=5e-3, rtol=5e-3), \
        float(jnp.max(jnp.abs(out1 - ref1)))

    # ---- 2) BN-free MLP, larger batch: fused path with an M-parallel grid ----
    defs2 = [LayerDef('Linear', 128, False, 'ReLU'),
             LayerDef('Linear', 64, False, 'Sigmoid'),
             LayerDef('Linear', 32, False, None)]
    x2 = jax.random.normal(k[2], (512, 64), jnp.float32)
    p2 = init_mlp_params(k[3], 64, defs2)
    out2 = jax.block_until_ready(mlp_forward(x2, p2, defs2))
    ref2 = mlp_reference(x2, p2, defs2)
    assert out2.shape == (512, 32), out2.shape
    assert jnp.allclose(out2, ref2, atol=5e-3, rtol=5e-3), \
        float(jnp.max(jnp.abs(out2 - ref2)))

    # ---- 3) direct test of the K-tiled matmul kernel (bias + ReLU epilogue) ----
    B3, K3, N3 = 256, 384, 320
    x3 = jax.random.normal(k[4], (B3, K3), jnp.float32)
    w3 = jax.random.normal(k[5], (K3, N3), jnp.float32) * 0.05
    b3 = jax.random.normal(k[6], (N3,), jnp.float32) * 0.1
    K3p, N3p = _round_up(K3, 128), _round_up(N3, 128)
    w3p = (jnp.zeros((K3p, N3p), jnp.float32).at[:K3, :N3].set(w3)
           .astype(jnp.bfloat16))
    aff3 = jnp.zeros((3, N3p), jnp.float32).at[0, :N3].set(b3)
    y3 = jax.block_until_ready(tiled_linear(x3, w3p, aff3, activation='ReLU'))
    ref3 = jnp.maximum(
        jnp.dot(x3.astype(jnp.bfloat16), w3p[:K3, :N3],
                preferred_element_type=jnp.float32) + b3[None, :], 0.0)
    assert jnp.allclose(y3[:B3, :N3], ref3, atol=1e-2, rtol=1e-2), \
        float(jnp.max(jnp.abs(y3[:B3, :N3] - ref3)))

    # ---- 4) tiled fallback with the fused BatchNorm epilogue kernels ----
    defs4 = [LayerDef('Linear', 160, False, 'ReLU'),
             LayerDef('Linear', 80, True, 'Tanh')]
    x4 = jax.random.normal(k[7], (190, 96), jnp.float32)   # 190: exercises row masking
    p4 = init_mlp_params(jax.random.fold_in(key, 99), 96, defs4)
    out4 = jax.block_until_ready(_mlp_forward_tiled(x4, p4, defs4))
    ref4 = mlp_reference(x4, p4, defs4)
    assert out4.shape == (190, 80), out4.shape
    assert jnp.allclose(out4, ref4, atol=5e-3, rtol=5e-3), \
        float(jnp.max(jnp.abs(out4 - ref4)))

    print("KERNEL_OK")
</pallas_src>

<mosaic_0001>
module attributes {stable_mosaic.version = 11 : i64} {
  func.func @_fused_mlp_kernel(%arg0: memref<16x128xbf16, #tpu.memory_space<vmem>>, %arg1: memref<128x128xbf16, #tpu.memory_space<vmem>>, %arg2: memref<3x128xf32, #tpu.memory_space<vmem>>, %arg3: memref<128x128xbf16, #tpu.memory_space<vmem>>, %arg4: memref<3x128xf32, #tpu.memory_space<vmem>>, %arg5: memref<128x128xbf16, #tpu.memory_space<vmem>>, %arg6: memref<3x128xf32, #tpu.memory_space<vmem>>, %arg7: memref<16x128xf32, #tpu.memory_space<vmem>>) attributes {dimension_semantics = [], scalar_prefetch = 0 : i64, scratch_operands = 0 : i64, tpu.core_type = #tpu.core_type<tc>} {
    %c0 = arith.constant 0 : index
    %c0_0 = arith.constant 0 : index
    %0 = vector.load %arg0[%c0, %c0_0] : memref<16x128xbf16, #tpu.memory_space<vmem>>, vector<16x128xbf16>
    %1 = tpu.iota {dimensions = array<i32: 0>} : vector<16x1xi32>
    %c8_i32 = arith.constant 8 : i32
    %2 = vector.broadcast %c8_i32 : i32 to vector<16x1xi32>
    %3 = arith.cmpi slt, %1, %2 : vector<16x1xi32>
    %4 = arith.extui %3 : vector<16x1xi1> to vector<16x1xi32>
    %5 = arith.sitofp %4 : vector<16x1xi32> to vector<16x1xf32>
    %c0_1 = arith.constant 0 : index
    %c0_2 = arith.constant 0 : index
    %6 = vector.load %arg1[%c0_1, %c0_2] : memref<128x128xbf16, #tpu.memory_space<vmem>>, vector<128x128xbf16>
    %c0_3 = arith.constant 0 : index
    %c0_4 = arith.constant 0 : index
    %7 = vector.load %arg2[%c0_3, %c0_4] : memref<3x128xf32, #tpu.memory_space<vmem>>, vector<3x128xf32>
    %cst = arith.constant dense<0.000000e+00> : vector<16x128xf32>
    %8 = tpu.matmul %0, %6, %cst {dimension_numbers = #tpu.dot_dimension_numbers<[1], [0], [0], [1], [0, 0, 1, 1], [], []>} : vector<16x128xbf16>, vector<128x128xbf16>, vector<16x128xf32> -> vector<16x128xf32>
    %9 = vector.broadcast %5 : vector<16x1xf32> to vector<16x128xf32>
    %10 = arith.mulf %8, %9 : vector<16x128xf32>
    %cst_5 = arith.constant dense<0.000000e+00> : vector<128xf32>
    %11 = vector.multi_reduction <add>, %10, %cst_5 [0] : vector<16x128xf32> to vector<128xf32>
    %12 = vector.shape_cast %11 : vector<128xf32> to vector<1x128xf32>
    %cst_6 = arith.constant 1.250000e-01 : f32
    %13 = vector.broadcast %cst_6 : f32 to vector<1x128xf32>
    %14 = arith.mulf %12, %13 : vector<1x128xf32>
    %15 = vector.broadcast %14 : vector<1x128xf32> to vector<16x128xf32>
    %16 = arith.subf %8, %15 : vector<16x128xf32>
    %17 = vector.broadcast %5 : vector<16x1xf32> to vector<16x128xf32>
    %18 = arith.mulf %16, %17 : vector<16x128xf32>
    %19 = arith.mulf %18, %18 : vector<16x128xf32>
    %cst_7 = arith.constant dense<0.000000e+00> : vector<128xf32>
    %20 = vector.multi_reduction <add>, %19, %cst_7 [0] : vector<16x128xf32> to vector<128xf32>
    %21 = vector.shape_cast %20 : vector<128xf32> to vector<1x128xf32>
    %cst_8 = arith.constant 1.250000e-01 : f32
    %22 = vector.broadcast %cst_8 : f32 to vector<1x128xf32>
    %23 = arith.mulf %21, %22 : vector<1x128xf32>
    %24 = vector.broadcast %14 : vector<1x128xf32> to vector<16x128xf32>
    %25 = arith.subf %8, %24 : vector<16x128xf32>
    %cst_9 = arith.constant 9.99999974E-6 : f32
    %26 = vector.broadcast %cst_9 : f32 to vector<1x128xf32>
    %27 = arith.addf %23, %26 : vector<1x128xf32>
    %28 = math.rsqrt %27 : vector<1x128xf32>
    %29 = vector.broadcast %28 : vector<1x128xf32> to vector<16x128xf32>
    %30 = arith.mulf %25, %29 : vector<16x128xf32>
    %31 = vector.extract_strided_slice %7 {offsets = [1, 0], sizes = [1, 128], strides = [1, 1]} : vector<3x128xf32> to vector<1x128xf32>
    %32 = vector.broadcast %31 : vector<1x128xf32> to vector<16x128xf32>
    %33 = arith.mulf %30, %32 : vector<16x128xf32>
    %34 = vector.extract_strided_slice %7 {offsets = [2, 0], sizes = [1, 128], strides = [1, 1]} : vector<3x128xf32> to vector<1x128xf32>
    %35 = vector.broadcast %34 : vector<1x128xf32> to vector<16x128xf32>
    %36 = arith.addf %33, %35 : vector<16x128xf32>
    %cst_10 = arith.constant 0.000000e+00 : f32
    %37 = vector.broadcast %cst_10 : f32 to vector<16x128xf32>
    %38 = arith.maximumf %36, %37 : vector<16x128xf32>
    %39 = arith.truncf %38 : vector<16x128xf32> to vector<16x128xbf16>
    %c0_11 = arith.constant 0 : index
    %c0_12 = arith.constant 0 : index
    %40 = vector.load %arg3[%c0_11, %c0_12] : memref<128x128xbf16, #tpu.memory_space<vmem>>, vector<128x128xbf16>
    %c0_13 = arith.constant 0 : index
    %c0_14 = arith.constant 0 : index
    %41 = vector.load %arg4[%c0_13, %c0_14] : memref<3x128xf32, #tpu.memory_space<vmem>>, vector<3x128xf32>
    %cst_15 = arith.constant dense<0.000000e+00> : vector<16x128xf32>
    %42 = tpu.matmul %39, %40, %cst_15 {dimension_numbers = #tpu.dot_dimension_numbers<[1], [0], [0], [1], [0, 0, 1, 1], [], []>} : vector<16x128xbf16>, vector<128x128xbf16>, vector<16x128xf32> -> vector<16x128xf32>
    %43 = vector.extract_strided_slice %41 {offsets = [0, 0], sizes = [1, 128], strides = [1, 1]} : vector<3x128xf32> to vector<1x128xf32>
    %44 = vector.broadcast %43 : vector<1x128xf32> to vector<16x128xf32>
    %45 = arith.addf %42, %44 : vector<16x128xf32>
    %46 = math.tanh %45 : vector<16x128xf32>
    %47 = arith.truncf %46 : vector<16x128xf32> to vector<16x128xbf16>
    %c0_16 = arith.constant 0 : index
    %c0_17 = arith.constant 0 : index
    %48 = vector.load %arg5[%c0_16, %c0_17] : memref<128x128xbf16, #tpu.memory_space<vmem>>, vector<128x128xbf16>
    %c0_18 = arith.constant 0 : index
    %c0_19 = arith.constant 0 : index
    %49 = vector.load %arg6[%c0_18, %c0_19] : memref<3x128xf32, #tpu.memory_space<vmem>>, vector<3x128xf32>
    %cst_20 = arith.constant dense<0.000000e+00> : vector<16x128xf32>
    %50 = tpu.matmul %47, %48, %cst_20 {dimension_numbers = #tpu.dot_dimension_numbers<[1], [0], [0], [1], [0, 0, 1, 1], [], []>} : vector<16x128xbf16>, vector<128x128xbf16>, vector<16x128xf32> -> vector<16x128xf32>
    %51 = vector.extract_strided_slice %49 {offsets = [0, 0], sizes = [1, 128], strides = [1, 1]} : vector<3x128xf32> to vector<1x128xf32>
    %52 = vector.broadcast %51 : vector<1x128xf32> to vector<16x128xf32>
    %53 = arith.addf %50, %52 : vector<16x128xf32>
    %c0_21 = arith.constant 0 : index
    %c0_22 = arith.constant 0 : index
    %54 = vector.load %arg7[%c0_21, %c0_22] : memref<16x128xf32, #tpu.memory_space<vmem>>, vector<16x128xf32>
    tpu.vector_store %arg7[%c0_21, %c0_22], %53 {strides = array<i32>} : memref<16x128xf32, #tpu.memory_space<vmem>>, vector<16x128xf32>,
    return
  }
}

</mosaic_0001>

<bundles_post_ra>
// kernel: tpu_custom_call.1
= control target key start
LH: loop header
LB: loop body
LE: loop exit
PB: predicated region body
PF: predicated region fallthrough
CT: control target
= control target key end

     0   :  { %12 = vsyncpa [#allocation3], 0  ;;  %s905_s0 = inlined_call_operand.hbm [shape: bf16[16,128], index: 0, kind: input, shape index: {}]   ;;  %s906_s1 = inlined_call_operand.hbm [shape: bf16[128,128], index: 1, kind: input, shape index: {}]   ;;  %s907_s2 = inlined_call_operand.hbm [shape: f32[3,128], index: 2, kind: input, shape index: {}]   ;;  %s908_s3 = inlined_call_operand.hbm [shape: bf16[128,128], index: 3, kind: input, shape index: {}]   ;;  %s909_s4 = inlined_call_operand.vmem [shape: f32[3,128], index: 4, kind: input, shape index: {}]   ;;  %s910_s5 = inlined_call_operand.hbm [shape: bf16[128,128], index: 5, kind: input, shape index: {}]   ;;  %s911_s6 = inlined_call_operand.vmem [shape: f32[3,128], index: 6, kind: input, shape index: {}]   ;;  %s912_s7 = inlined_call_operand.hbm [shape: f32[16,128], index: 7, kind: output, shape index: {}]  }
   0x1   :  { %13 = vsyncpa [#allocation6], 0 }
   0x2   :  { %14 = vsyncpa [#allocation9], 0 }
   0x3   :  { %15 = vsyncpa [#allocation4], 0  ;;  %s787_s24 = smov [#allocation5]   ;;  %s788_s26 = smov [#allocation8]  }
   0x4   :  { %s33_s25 = sshll.u32 %s787_s24, 4  ;;  %s55_s27 = sshll.u32 %s788_s26, 4  ;;  %s34_s25 = int_to_ptr.vmem [resolvable:$true] %s33_s25  ;;  %s56_s27 = int_to_ptr.vmem [resolvable:$true] %s55_s27 }
   0x5   :  { %s667_s28 = scalar_lea.vmem %s34_s25, 1024  ;;  %p672_p1 = scmp.lt.s32.totalorder %s34_s25, %s34_s25 }
   0x6   :  { %p668_p0 = scmp.ne.s32.totalorder %s34_s25, %s667_s28  ;;  %p673_p2 = scmp.lt.s32.totalorder %s667_s28, %s667_s28 }
   0x8   :  { %p674_p3 = por %p673_p2, %p672_p1 }
   0xa   :  { %p675_p4 = pnand %p674_p3, %p668_p0 }
   0xc   :  { %678 = shalt.err (!%p675_p4)
}
   0xd   :  { %s789_s29 = smov 64   ;;  %s790_s30 = smov 4  }
   0xe   :  { %39 = dma.hbm_to_vmem [thread:$0]  %s906_s1, 1024, %s34_s25, [#allocation6], %s789_s29, %s789_s29, %s790_s30  }
   0xf   :  { %s687_s10 = scalar_lea.vmem %s56_s27, 1024  ;;  %p692_p6 = scmp.lt.s32.totalorder %s56_s27, %s56_s27 }
  0x10   :  { %p688_p5 = scmp.ne.s32.totalorder %s56_s27, %s687_s10  ;;  %p693_p7 = scmp.lt.s32.totalorder %s687_s10, %s687_s10 }
  0x12   :  { %p694_p8 = por %p693_p7, %p692_p6 }
  0x14   :  { %p695_p9 = pnand %p694_p8, %p688_p5 }
  0x16   :  { %698 = shalt.err (!%p695_p9)
}
  0x17   :  { %61 = dma.hbm_to_vmem [thread:$0]  %s908_s3, 1024, %s56_s27, [#allocation9], %s789_s29, %s789_s29, %s790_s30  }
  0x18   :  { %s791_s13 = smov [#allocation2]   ;;  %s792_s15 = smov [#allocation7]  }
  0x19   :  { %s21_s14 = sshll.u32 %s791_s13, 4  ;;  %s46_s16 = sshll.u32 %s792_s15, 4  ;;  %s22_s14 = int_to_ptr.vmem [resolvable:$true] %s21_s14  ;;  %s47_s16 = int_to_ptr.vmem [resolvable:$true] %s46_s16 }
  0x1a   :  { %s707_s1 = scalar_lea.vmem %s22_s14, 128  ;;  %p712_p11 = scmp.lt.s32.totalorder %s22_s14, %s22_s14 }
  0x1b   :  { %p708_p10 = scmp.ne.s32.totalorder %s22_s14, %s707_s1  ;;  %p713_p12 = scmp.lt.s32.totalorder %s707_s1, %s707_s1 }
  0x1d   :  { %p714_p13 = por %p713_p12, %p712_p11 }
  0x1f   :  { %p715_p0 = pnand %p714_p13, %p708_p10 }
  0x21   :  { %718 = shalt.err (!%p715_p0)
}
  0x22   :  { %27 = dma.hbm_to_vmem [thread:$0]  %s905_s0, 128, %s22_s14, [#allocation3], %s789_s29, %s789_s29, %s790_s30  }
  0x23   :  { %s727_s3 = scalar_lea.vmem %s47_s16, 64  ;;  %p732_p2 = scmp.lt.s32.totalorder %s47_s16, %s47_s16 }
  0x24   :  { %p728_p1 = scmp.ne.s32.totalorder %s47_s16, %s727_s3  ;;  %p733_p3 = scmp.lt.s32.totalorder %s727_s3, %s727_s3 }
  0x26   :  { %p734_p4 = por %p733_p3, %p732_p2 }
  0x28   :  { %p735_p5 = pnand %p734_p4, %p728_p1 }
  0x2a   :  { %738 = shalt.err (!%p735_p5)
}
  0x2b   :  { %49 = dma.hbm_to_vmem [thread:$0]  %s907_s2, 64, %s47_s16, [#allocation6]  }
  0x2c   :  { %s793_s21 = smov [#allocation10]  }
  0x2d   :  { %s69_s22 = sshll.u32 %s793_s21, 4  ;;  %s70_s22 = int_to_ptr.vmem [resolvable:$true] %s69_s22 }
  0x2e   :  { %s747_s23 = scalar_lea.vmem %s70_s22, 1024  ;;  %p752_p7 = scmp.lt.s32.totalorder %s70_s22, %s70_s22 }
  0x2f   :  { %p748_p6 = scmp.ne.s32.totalorder %s70_s22, %s747_s23  ;;  %p753_p8 = scmp.lt.s32.totalorder %s747_s23, %s747_s23 }
  0x31   :  { %p754_p9 = por %p753_p8, %p752_p7 }
  0x33   :  { %p755_p10 = pnand %p754_p9, %p748_p6 }
  0x35   :  { %758 = shalt.err (!%p755_p10)
}
  0x36   :  { %75 = dma.hbm_to_vmem [thread:$0]  %s910_s5, 1024, %s70_s22, [#allocation9], %s789_s29, %s789_s29, %s790_s30  }
  0x37   :  { %779 = dma.done.wait [#allocation3], 128  }
  0x38   :  { %780 = vsyncadd [#allocation3], 4294967168 }
  0x39   :  { %781 = dma.done.wait [#allocation6], 1088  }
  0x3a   :  { %782 = vsyncadd [#allocation6], 4294966208 }
  0x3b   :  { %783 = dma.done.wait [#allocation9], 2048  }
  0x3c   :  { %784 = vsyncadd [#allocation9], 4294965248  ;;  %v794_v0 = vmov 0.0   ;;  %vm795_vm0 = vmmov 0   ;;  %v628_v1 = vld [vmem:[#allocation5 + $0x38] sm:$0xff]   ;;  %v629_v2 = vld [vmem:[#allocation5 + $0x30] sm:$0xff]   ;;  %v245_v47 = vlaneseq }
  0x3d   :  { %556 = vmatprep.subr.bf16.mxu0 %v794_v0  ;;  %572 = vmatprep.mubr.msk.bf16.mxu0 %vm795_vm0, %v794_v0  ;;  %v630_v3 = vld [vmem:[#allocation5 + $0x28] sm:$0xff]   ;;  %v631_v4 = vld [vmem:[#allocation5 + $0x20] sm:$0xff]   ;;  %v632_v5 = vld [vmem:[#allocation5 + $0x18] sm:$0xff]  }
  0x3e   :  { %576 = vmatprep.subr.bf16.mxu1 %v794_v0  ;;  %592 = vmatprep.mubr.msk.bf16.mxu1 %vm795_vm0, %v794_v0  ;;  %v633_v6 = vld [vmem:[#allocation5 + $0x10] sm:$0xff]   ;;  %v634_v7 = vld [vmem:[#allocation5 + $0x8] sm:$0xff]   ;;  %v635_v8 = vld [vmem:[#allocation5] sm:$0xff]   ;;  %v246_v48 = vshrl.u32 %v245_v47, 7 }
  0x3f   :  { %557 = vmatpush3.bf16.msra.mxu0 %v628_v1  ;;  %v636_v9 = vld [vmem:[#allocation2] sm:$0xff]   ;;  %v639_v12 = vld [vmem:[#allocation8 + $0x28] sm:$0xff]   ;;  %v640_v13 = vld [vmem:[#allocation8 + $0x20] sm:$0xff]  }
  0x40   :  { %558 = vmatprep.subr.bf16.mxu0 %v794_v0  ;;  %v637_v10 = vld [vmem:[#allocation8 + $0x38] sm:$0xff]   ;;  %v638_v11 = vld [vmem:[#allocation8 + $0x30] sm:$0xff]   ;;  %v643_v16 = vld [vmem:[#allocation8 + $0x8] sm:$0xff]   ;;  %v247_v49 = vsub.s32 1, %v246_v48  ;;  %v253_v51 = vsub.s32 2, %v246_v48 }
  0x41   :  { %577 = vmatpush3.bf16.msra.mxu1 %v637_v10  ;;  %v641_v14 = vld [vmem:[#allocation8 + $0x18] sm:$0xff]   ;;  %v642_v15 = vld [vmem:[#allocation8 + $0x10] sm:$0xff]   ;;  %v644_v17 = vld [vmem:[#allocation8] sm:$0xff]  }
  0x42   :  { %578 = vmatprep.subr.bf16.mxu1 %v794_v0  ;;  %v645_v18 = vld [vmem:[#allocation10 + $0x38] sm:$0xff]   ;;  %v646_v19 = vld [vmem:[#allocation10 + $0x30] sm:$0xff]   ;;  %v647_v1 = vld [vmem:[#allocation10 + $0x28] sm:$0xff]  }
  0x43   :  { %559 = vmatpush3.bf16.msra.mxu0 %v629_v2  ;;  %v121_v50 = vld [vmem:[#allocation7] sm:$0x7]  ;;  %v648_v2 = vld [vmem:[#allocation10 + $0x20] sm:$0xff]  }
  0x44   :  { %560 = vmatprep.subr.bf16.mxu0 %v794_v0  ;;  %v248_v52 = vrot.slane %v121_v50, %v247_v49  ;;  %v254_v56 = vrot.slane %v121_v50, %v253_v51 }
  0x45   :  { %579 = vmatpush3.bf16.msra.mxu1 %v638_v11 }
  0x46   :  { %580 = vmatprep.subr.bf16.mxu1 %v794_v0 }
  0x47   :  { %561 = vmatpush3.bf16.msra.mxu0 %v630_v3  ;;  %v649_v3 = vld [vmem:[#allocation10 + $0x18] sm:$0xff]  }
  0x48   :  { %562 = vmatprep.subr.bf16.mxu0 %v794_v0 }
  0x49   :  { %581 = vmatpush3.bf16.msra.mxu1 %v639_v12 }
  0x4a   :  { %582 = vmatprep.subr.bf16.mxu1 %v794_v0 }
  0x4b   :  { %563 = vmatpush3.bf16.msra.mxu0 %v631_v4  ;;  %v650_v4 = vld [vmem:[#allocation10 + $0x10] sm:$0xff]  }
  0x4c   :  { %564 = vmatprep.subr.bf16.mxu0 %v794_v0 }
  0x4d   :  { %583 = vmatpush3.bf16.msra.mxu1 %v640_v13 }
  0x4e   :  { %584 = vmatprep.subr.bf16.mxu1 %v794_v0 }
  0x4f   :  { %565 = vmatpush3.bf16.msra.mxu0 %v632_v5  ;;  %v651_v5 = vld [vmem:[#allocation10 + $0x8] sm:$0xff]  }
  0x50   :  { %566 = vmatprep.subr.bf16.mxu0 %v794_v0 }
  0x51   :  { %585 = vmatpush3.bf16.msra.mxu1 %v641_v14 }
  0x52   :  { %586 = vmatprep.subr.bf16.mxu1 %v794_v0 }
  0x53   :  { %567 = vmatpush3.bf16.msra.mxu0 %v633_v6  ;;  %v652_v6 = vld [vmem:[#allocation10] sm:$0xff]  }
  0x54   :  { %568 = vmatprep.subr.bf16.mxu0 %v794_v0 }
  0x55   :  { %587 = vmatpush3.bf16.msra.mxu1 %v642_v15 }
  0x56   :  { %588 = vmatprep.subr.bf16.mxu1 %v794_v0 }
  0x57   :  { %569 = vmatpush3.bf16.msra.mxu0 %v634_v7  ;;  %v279_v7 = vsub.s32 0, %v246_v48 }
  0x58   :  { %570 = vmatprep.subr.bf16.mxu0 %v794_v0 }
  0x59   :  { %589 = vmatpush3.bf16.msra.mxu1 %v643_v16 }
  0x5a   :  { %590 = vmatprep.subr.bf16.mxu1 %v794_v0 }
  0x5b   :  { %571 = vmatpush3.bf16.msra.mxu0 %v635_v8  ;;  %v276_v8 = vld [vmem:[%s909_s4] sm:$0x7]  ;;  %s796_s4 = smov [#allocation11]  }
  0x5c   :  { %596 = vmatprep.subr.bf16.mxu0 %v794_v0  ;;  %s490_s27 = sshll.u32 %s796_s4, 4  ;;  %s491_s27 = int_to_ptr.vmem [resolvable:$true] %s490_s27 }
  0x5d   :  { %591 = vmatpush3.bf16.msra.mxu1 %v644_v17  ;;  %s759_s28 = scalar_lea.vmem %s491_s27, 256  ;;  %p764_p12 = scmp.lt.s32.totalorder %s491_s27, %s491_s27 }
  0x5e   :  { %573 = vmatmul.mubr.bf16.vlgmr.msra.gmra.mxu0 %v636_v9  ;;  %v280_v9 = vrot.slane %v276_v8, %v279_v7  ;;  %p760_p11 = scmp.ne.s32.totalorder %s491_s27, %s759_s28  ;;  %p765_p13 = scmp.lt.s32.totalorder %s759_s28, %s759_s28 }
  0x5f   :  { %612 = vmatprep.mubr.msk.bf16.mxu0 %vm795_vm0, %v794_v0  ;;  %597 = vmatpush3.bf16.msra.mxu0 %v645_v18 }
  0x60   :  { %598 = vmatprep.subr.bf16.mxu0 %v794_v0  ;;  %p766_p0 = por %p765_p13, %p764_p12 }
  0x62   :  { %p767_p1 = pnand %p766_p0, %p760_p11 }
  0x63   :  { %599 = vmatpush3.bf16.msra.mxu0 %v646_v19 }
  0x64   :  { %600 = vmatprep.subr.bf16.mxu0 %v794_v0 }
  0x67   :  { %601 = vmatpush3.bf16.msra.mxu0 %v647_v1 }
  0x68   :  { %602 = vmatprep.subr.bf16.mxu0 %v794_v0 }
  0x6b   :  { %603 = vmatpush3.bf16.msra.mxu0 %v648_v2 }
  0x6c   :  { %604 = vmatprep.subr.bf16.mxu0 %v794_v0 }
  0x6f   :  { %605 = vmatpush3.bf16.msra.mxu0 %v649_v3 }
  0x70   :  { %606 = vmatprep.subr.bf16.mxu0 %v794_v0 }
  0x73   :  { %607 = vmatpush3.bf16.msra.mxu0 %v650_v4 }
  0x74   :  { %608 = vmatprep.subr.bf16.mxu0 %v794_v0 }
  0x77   :  { %609 = vmatpush3.bf16.msra.mxu0 %v651_v5 }
  0x78   :  { %610 = vmatprep.subr.bf16.mxu0 %v794_v0  ;;  %v389_v0 = vld [vmem:[%s911_s6] sm:$0x7] }
  0x79   :  { %v393_v19 = vrot.slane %v389_v0, %v279_v7 }
  0x7b   :  { %611 = vmatpush3.bf16.msra.mxu0 %v652_v6 }
 0x11e   :  { %v210_v20 = vpop.f32.mrf.mxu0 }
 0x120   :  { %v574_v21 = vpop.f32.mrf.mxu0 }
 0x122   :  { %v213_v22 = vpop.f32.mrf.mxu0 }
 0x123   :  { %v218_v23 = vmul.f32 0.0, %v213_v22 }
 0x124   :  { %v575_v24 = vpop.f32.mrf.mxu0 }
 0x125   :  { %v219_v25 = vadd.f32 %v218_v23, %v210_v20 }
 0x127   :  { %v220_v26 = vrot.slane %v219_v25, 4 }
 0x129   :  { %v221_v27 = vadd.f32 %v220_v26, %v219_v25 }
 0x12b   :  { %v222_v28 = vrot.slane %v221_v27, 2 }
 0x12d   :  { %v223_v29 = vadd.f32 %v222_v28, %v221_v27 }
 0x12f   :  { %v224_v30 = vrot.slane %v223_v29, 1 }
 0x131   :  { %v225_v31 = vadd.f32 %v224_v30, %v223_v29 }
 0x133   :  { %v226_v32 = vmul.f32 0.125, %v225_v31 }
 0x135   :  { %v227_v33 = vsub.f32 %v210_v20, %v226_v32  ;;  %v228_v34 = vsub.f32 %v213_v22, %v226_v32 }
 0x137   :  { %v230_v35 = vmul.f32 0.0, %v228_v34  ;;  %v231_v36 = vmul.f32 %v227_v33, %v227_v33 }
 0x139   :  { %v232_v37 = vmul.f32 %v230_v35, %v230_v35 }
 0x13b   :  { %v233_v38 = vadd.f32 %v232_v37, %v231_v36 }
 0x13d   :  { %v234_v39 = vrot.slane %v233_v38, 4 }
 0x13f   :  { %v235_v40 = vadd.f32 %v234_v39, %v233_v38 }
 0x141   :  { %v236_v41 = vrot.slane %v235_v40, 2 }
 0x143   :  { %v237_v42 = vadd.f32 %v236_v41, %v235_v40 }
 0x145   :  { %v238_v43 = vrot.slane %v237_v42, 1 }
 0x147   :  { %v239_v44 = vadd.f32 %v238_v43, %v237_v42 }
 0x149   :  { %v240_v45 = vmul.f32 0.125, %v239_v44 }
 0x14b   :  { %v241_v46 = vadd.f32 1e-05, %v240_v45 }
 0x14d   :  { %653 = vrsqrt.f32 %v241_v46 }
 0x15a   :  { %v654_v53 = vpop.eup %653 }
 0x15b   :  { %v243_v54 = vmul.f32 %v654_v53, %v227_v33  ;;  %v244_v55 = vmul.f32 %v654_v53, %v228_v34 }
 0x15d   :  { %v250_v57 = vmul.f32 %v248_v52, %v244_v55  ;;  %v249_v58 = vmul.f32 %v248_v52, %v243_v54 }
 0x15f   :  { %v255_v59 = vadd.f32 %v254_v56, %v249_v58  ;;  %v256_v60 = vadd.f32 %v254_v56, %v250_v57 }
 0x161   :  { %v257_v61 = vmax.f32 %v255_v59, 0.0  ;;  %v258_v62 = vmax.f32 %v256_v60, 0.0 }
 0x163   :  { %v259_v63 = vpack.c.bf16 %v258_v62, %v257_v61 }
 0x165   :  { %593 = vmatmul.mubr.bf16.vlgmr.msra.gmra.mxu1 %v259_v63 }
 0x225   :  { %v363_v10 = vpop.f32.mrf.mxu1 }
 0x226   :  { %v364_v11 = vadd.f32 %v363_v10, %v280_v9 }
 0x227   :  { %v594_v12 = vpop.f32.mrf.mxu1 }
 0x228   :  { %655 = vtanh.f32 %v364_v11 }
 0x229   :  { %v366_v13 = vpop.f32.mrf.mxu1 }
 0x22a   :  { %v367_v14 = vadd.f32 %v366_v13, %v280_v9 }
 0x22b   :  { %v595_v15 = vpop.f32.mrf.mxu1 }
 0x22c   :  { %657 = vtanh.f32 %v367_v14 }
 0x235   :  { %v656_v16 = vpop.eup %655 }
 0x239   :  { %v658_v17 = vpop.eup %657 }
 0x23a   :  { %v372_v18 = vpack.c.bf16 %v658_v17, %v656_v16 }
 0x23c   :  { %613 = vmatmul.mubr.bf16.vlgmr.msra.gmra.mxu0 %v372_v18 }
 0x2fc   :  { %v476_v20 = vpop.f32.mrf.mxu0 }
 0x2fd   :  { %v477_v21 = vadd.f32 %v476_v20, %v393_v19 }
 0x2fe   :  { %v614_v22 = vpop.f32.mrf.mxu0 }
 0x2ff   :  { %483 = vst [vmem:[#allocation11] sm:$0xff] %v477_v21 }
 0x300   :  { %v479_v23 = vpop.f32.mrf.mxu0 }
 0x301   :  { %v480_v24 = vadd.f32 %v479_v23, %v393_v19 }
 0x302   :  { %v615_v25 = vpop.f32.mrf.mxu0 }
 0x303   :  { %484 = vst [vmem:[#allocation11 + $0x8] sm:$0xff] %v480_v24 }
 0x304   :  { %770 = shalt.err (!%p767_p1)
}
 0x305   :  { %s797_s6 = smov 128   ;;  %s798_s29 = smov 8  }
 0x306   :  { %496 = dma.vmem_to_hbm [thread:$0]  %s491_s27, 256, %s912_s7, [#allocation4], %s797_s6, %s797_s6, %s798_s29  }
 0x307   :  { %785 = dma.done.wait [#allocation4], 256  }
 0x308   :  { %786 = vsyncadd [#allocation4], 4294967040 }
 0x309   :  { %500 = vsyncpa [#allocation3], 1 }
 0x30a   :  { %501 = vsyncpa [#allocation6], 1 }
 0x30b   :  { %502 = vsyncpa [#allocation9], 1 }
 0x30c   :  { %503 = vsyncpa [#allocation4], 1 }

</bundles_post_ra>
